<compile_context>
chip_gen: v7x
topology: tpu7x:2x2x1
jax: 0.10.0
libtpu: 0.0.40
codegen_flags: <defaults>
</compile_context>

<pallas_src>
import jax
import jax.numpy as jnp
from jax.experimental import pallas as pl
from jax.experimental.pallas import tpu as pltpu

B, CIN, H, W = 2, 4, 16, 16      # input (NCHW)
COUT = 8                         # Conv2d(CIN, COUT, kernel_size=3, padding=1)
K = 3
WIN, WOUT = W, 16                # Linear(WIN, WOUT) acts on the last (width) dim
EPS = 1e-5                       # BatchNorm2d eps; fresh module => training-mode stats
N_STAT = B * H * WOUT            # per-channel element count for BN = 512
PATCH = K * (W + 2) * CIN        # 216 (multiple of 8)
OUTC = COUT * WOUT               # 128 (lane-dense)


def fused_kernel(p_ref, w_ref, b_ref, g_ref, bt_ref, sel_ref, o_ref):
    # p_ref  : (B*H, PATCH)  = (32, 216)  H-im2col patches
    # w_ref  : (PATCH, OUTC) = (216, 128) fused conv+linear weight
    # b_ref  : (1, OUTC)     fused conv+linear bias, layout (cout, j)
    # g_ref  : (1, OUTC)     BN gamma, each channel value repeated WOUT times
    # bt_ref : (1, OUTC)     BN beta,  each channel value repeated WOUT times
    # sel_ref: (OUTC, OUTC)  kron(eye(COUT), ones(WOUT,WOUT)) / N_STAT
    # o_ref  : (B*H, OUTC)   = (32, 128) lane-dense output, col = cout*WOUT + j

    # --- fused Conv2d(3x3, pad=1) + Linear(W->WOUT): a single MXU matmul ---
    lin = jnp.dot(p_ref[...], w_ref[...],
                  preferred_element_type=jnp.float32) + b_ref[...]

    # --- BatchNorm2d (training-mode batch stats), one pass, lane-dense ---
    stats = jnp.concatenate(
        [jnp.sum(lin, axis=0, keepdims=True),
         jnp.sum(lin * lin, axis=0, keepdims=True)], axis=0)          # (2, 128)
    red = jnp.dot(stats, sel_ref[...],
                  preferred_element_type=jnp.float32)                 # (2, 128)
    mean = red[0:1, :]                                                # E[x] per channel
    var = red[1:2, :] - mean * mean                                   # E[x^2] - E[x]^2
    y = (lin - mean) * jax.lax.rsqrt(var + EPS) * g_ref[...] + bt_ref[...]

    # --- SiLU ---
    o_ref[...] = y * jax.nn.sigmoid(y)


def my_model_pallas(x, params):
    cw, cb, lw, lb, gamma, beta = params

    # ---- input pre-layout: pad, NCHW->NHWC, im2col over H only ----
    xp = jnp.pad(x, ((0, 0), (0, 0), (1, 1), (1, 1)))                 # (B,CIN,H+2,W+2)
    xp = jnp.transpose(xp, (0, 2, 3, 1))                              # (B,H+2,W+2,CIN)
    patches = jnp.stack([xp[:, kh:kh + H] for kh in range(K)], axis=2)  # (B,H,K,W+2,CIN)
    patches = patches.reshape(B * H, PATCH)                           # (32, 216)

    # ---- fused conv+linear weight (trace-level packing) ----
    # M[kw, wp, j] = lw[j, wp - kw] if 0 <= wp - kw < W else 0
    eye_w = jnp.eye(W, dtype=jnp.float32)
    m = jnp.stack([jnp.pad(eye_w, ((kw, K - 1 - kw), (0, 0))) @ lw.T
                   for kw in range(K)])                               # (K, W+2, WOUT)
    big_w = jnp.einsum('oikl,lpj->kpioj', cw, m)                      # (kh,wp,cin,cout,j)
    big_w = big_w.reshape(PATCH, OUTC)                                # (216, 128)

    # fused bias: cb[cout] * sum_w lw[j, w] + lb[j], flattened (cout, j)
    bias = (cb[:, None] * jnp.sum(lw, axis=1)[None, :] + lb[None, :]).reshape(1, OUTC)

    gamma_b = jnp.repeat(gamma, WOUT).reshape(1, OUTC)
    beta_b = jnp.repeat(beta, WOUT).reshape(1, OUTC)

    # per-channel mean selector / broadcaster (pure constant; XLA folds it)
    sel = (jnp.kron(jnp.eye(COUT, dtype=jnp.float32),
                    jnp.ones((WOUT, WOUT), jnp.float32)) / N_STAT)

    vmem = pl.BlockSpec(memory_space=pltpu.MemorySpace.VMEM)
    out = pl.pallas_call(
        fused_kernel,
        out_shape=jax.ShapeDtypeStruct((B * H, OUTC), jnp.float32),
        in_specs=[vmem] * 6,
        out_specs=vmem,
    )(patches, big_w, bias, gamma_b, beta_b, sel)

    # TODO(synk): on v7x a 2-point "parallel" grid over the row axis could use
    # the second TensorCore, but BN batch stats would then need a cross-core
    # reduction; not worth it at this problem size.

    out = out.reshape(B, H, COUT, WOUT)
    return jnp.transpose(out, (0, 2, 1, 3))                           # NCHW (B,COUT,H,WOUT)


def reference(x, params):
    """Pure-JAX reference reproducing the PyTorch forward (NCHW)."""
    cw, cb, lw, lb, gamma, beta = params
    conv = jax.lax.conv_general_dilated(
        x, cw, window_strides=(1, 1), padding=((1, 1), (1, 1)),
        dimension_numbers=('NCHW', 'OIHW', 'NCHW')) + cb.reshape(1, -1, 1, 1)
    lin = jnp.einsum('bchw,jw->bchj', conv, lw) + lb
    mean = jnp.mean(lin, axis=(0, 2, 3), keepdims=True)
    var = jnp.mean((lin - mean) ** 2, axis=(0, 2, 3), keepdims=True)
    xhat = (lin - mean) / jnp.sqrt(var + EPS)
    y = xhat * gamma.reshape(1, -1, 1, 1) + beta.reshape(1, -1, 1, 1)
    return y * jax.nn.sigmoid(y)


def init_params(key):
    # Deterministic init following PyTorch default schemes (uniform fan-in bounds).
    k1, k2, k3, k4 = jax.random.split(key, 4)
    bc = 1.0 / (CIN * K * K) ** 0.5
    cw = jax.random.uniform(k1, (COUT, CIN, K, K), jnp.float32, -bc, bc)
    cb = jax.random.uniform(k2, (COUT,), jnp.float32, -bc, bc)
    bl = 1.0 / WIN ** 0.5
    lw = jax.random.uniform(k3, (WOUT, WIN), jnp.float32, -bl, bl)
    lb = jax.random.uniform(k4, (WOUT,), jnp.float32, -bl, bl)
    gamma = jnp.ones((COUT,), jnp.float32)
    beta = jnp.zeros((COUT,), jnp.float32)
    return cw, cb, lw, lb, gamma, beta


if __name__ == "__main__":
    key = jax.random.PRNGKey(0)
    kx, kp = jax.random.split(key)
    x = jax.random.normal(kx, (B, CIN, H, W), jnp.float32)
    params = init_params(kp)

    out = jax.jit(my_model_pallas)(x, params)
    out = jax.block_until_ready(out)

    ref = reference(x, params)
    assert out.shape == (B, COUT, H, WOUT), out.shape
    assert jnp.allclose(out, ref, atol=1e-2, rtol=1e-2), float(jnp.max(jnp.abs(out - ref)))
    print("KERNEL_OK")
</pallas_src>

<mosaic_0001>
module attributes {stable_mosaic.version = 11 : i64} {
  func.func @fused_kernel(%arg0: memref<32x216xf32, #tpu.memory_space<vmem>>, %arg1: memref<216x128xf32, #tpu.memory_space<vmem>>, %arg2: memref<1x128xf32, #tpu.memory_space<vmem>>, %arg3: memref<1x128xf32, #tpu.memory_space<vmem>>, %arg4: memref<1x128xf32, #tpu.memory_space<vmem>>, %arg5: memref<128x128xf32, #tpu.memory_space<vmem>>, %arg6: memref<32x128xf32, #tpu.memory_space<vmem>>) attributes {dimension_semantics = [], scalar_prefetch = 0 : i64, scratch_operands = 0 : i64, tpu.core_type = #tpu.core_type<tc>} {
    %c0 = arith.constant 0 : index
    %c0_0 = arith.constant 0 : index
    %0 = vector.load %arg0[%c0, %c0_0] : memref<32x216xf32, #tpu.memory_space<vmem>>, vector<32x216xf32>
    %c0_1 = arith.constant 0 : index
    %c0_2 = arith.constant 0 : index
    %1 = vector.load %arg1[%c0_1, %c0_2] : memref<216x128xf32, #tpu.memory_space<vmem>>, vector<216x128xf32>
    %cst = arith.constant dense<0.000000e+00> : vector<32x128xf32>
    %2 = tpu.matmul %0, %1, %cst {dimension_numbers = #tpu.dot_dimension_numbers<[1], [0], [0], [1], [0, 0, 1, 1], [], []>} : vector<32x216xf32>, vector<216x128xf32>, vector<32x128xf32> -> vector<32x128xf32>
    %c0_3 = arith.constant 0 : index
    %c0_4 = arith.constant 0 : index
    %3 = vector.load %arg2[%c0_3, %c0_4] : memref<1x128xf32, #tpu.memory_space<vmem>>, vector<1x128xf32>
    %4 = vector.broadcast %3 : vector<1x128xf32> to vector<32x128xf32>
    %5 = arith.addf %2, %4 : vector<32x128xf32>
    %cst_5 = arith.constant dense<0.000000e+00> : vector<128xf32>
    %6 = vector.multi_reduction <add>, %5, %cst_5 [0] : vector<32x128xf32> to vector<128xf32>
    %7 = vector.shape_cast %6 : vector<128xf32> to vector<1x128xf32>
    %8 = arith.mulf %5, %5 : vector<32x128xf32>
    %cst_6 = arith.constant dense<0.000000e+00> : vector<128xf32>
    %9 = vector.multi_reduction <add>, %8, %cst_6 [0] : vector<32x128xf32> to vector<128xf32>
    %10 = vector.shape_cast %9 : vector<128xf32> to vector<1x128xf32>
    %11 = tpu.concatenate %7, %10 in 0 : vector<1x128xf32>, vector<1x128xf32> -> vector<2x128xf32>
    %c0_7 = arith.constant 0 : index
    %c0_8 = arith.constant 0 : index
    %12 = vector.load %arg5[%c0_7, %c0_8] : memref<128x128xf32, #tpu.memory_space<vmem>>, vector<128x128xf32>
    %cst_9 = arith.constant dense<0.000000e+00> : vector<2x128xf32>
    %13 = tpu.matmul %11, %12, %cst_9 {dimension_numbers = #tpu.dot_dimension_numbers<[1], [0], [0], [1], [0, 0, 1, 1], [], []>} : vector<2x128xf32>, vector<128x128xf32>, vector<2x128xf32> -> vector<2x128xf32>
    %14 = vector.extract_strided_slice %13 {offsets = [0, 0], sizes = [1, 128], strides = [1, 1]} : vector<2x128xf32> to vector<1x128xf32>
    %15 = vector.extract_strided_slice %13 {offsets = [1, 0], sizes = [1, 128], strides = [1, 1]} : vector<2x128xf32> to vector<1x128xf32>
    %16 = arith.mulf %14, %14 : vector<1x128xf32>
    %17 = arith.subf %15, %16 : vector<1x128xf32>
    %18 = vector.broadcast %14 : vector<1x128xf32> to vector<32x128xf32>
    %19 = arith.subf %5, %18 : vector<32x128xf32>
    %cst_10 = arith.constant 9.99999974E-6 : f32
    %20 = vector.broadcast %cst_10 : f32 to vector<1x128xf32>
    %21 = arith.addf %17, %20 : vector<1x128xf32>
    %22 = math.rsqrt %21 : vector<1x128xf32>
    %23 = vector.broadcast %22 : vector<1x128xf32> to vector<32x128xf32>
    %24 = arith.mulf %19, %23 : vector<32x128xf32>
    %c0_11 = arith.constant 0 : index
    %c0_12 = arith.constant 0 : index
    %25 = vector.load %arg3[%c0_11, %c0_12] : memref<1x128xf32, #tpu.memory_space<vmem>>, vector<1x128xf32>
    %26 = vector.broadcast %25 : vector<1x128xf32> to vector<32x128xf32>
    %27 = arith.mulf %24, %26 : vector<32x128xf32>
    %c0_13 = arith.constant 0 : index
    %c0_14 = arith.constant 0 : index
    %28 = vector.load %arg4[%c0_13, %c0_14] : memref<1x128xf32, #tpu.memory_space<vmem>>, vector<1x128xf32>
    %29 = vector.broadcast %28 : vector<1x128xf32> to vector<32x128xf32>
    %30 = arith.addf %27, %29 : vector<32x128xf32>
    %31 = arith.negf %30 : vector<32x128xf32>
    %32 = math.exp %31 : vector<32x128xf32>
    %cst_15 = arith.constant 1.000000e+00 : f32
    %33 = vector.broadcast %cst_15 : f32 to vector<32x128xf32>
    %34 = arith.addf %33, %32 : vector<32x128xf32>
    %35 = arith.divf %33, %34 : vector<32x128xf32>
    %36 = arith.mulf %30, %35 : vector<32x128xf32>
    %c0_16 = arith.constant 0 : index
    %c0_17 = arith.constant 0 : index
    %37 = vector.load %arg6[%c0_16, %c0_17] : memref<32x128xf32, #tpu.memory_space<vmem>>, vector<32x128xf32>
    tpu.vector_store %arg6[%c0_16, %c0_17], %36 {strides = array<i32>} : memref<32x128xf32, #tpu.memory_space<vmem>>, vector<32x128xf32>,
    return
  }
}

</mosaic_0001>

<bundles_post_ra>
// kernel: my_model_pallas.1
= control target key start
LH: loop header
LB: loop body
LE: loop exit
PB: predicated region body
PF: predicated region fallthrough
CT: control target
= control target key end

     0   :  { %v501_v0 = vmov 0.0|0.0   ;;  %vm65_vm0 = vcmask 719872   ;;  %v502_v41 = vmov 0.0   ;;  %vm503_vm1 = vmmov 0   ;;  %s738_s1 = inlined_call_operand.vmem [shape: f32[216,128], index: 1, kind: input, shape index: {}]   ;;  %s739_s0 = inlined_call_operand.vmem [shape: f32[32,216], index: 0, kind: input, shape index: {}]   ;;  %s740_s5 = inlined_call_operand.vmem [shape: f32[128,128], index: 5, kind: input, shape index: {}]   ;;  %s741_s2 = inlined_call_operand.vmem [shape: f32[1,128], index: 2, kind: input, shape index: {}]   ;;  %s742_s3 = inlined_call_operand.vmem [shape: f32[1,128], index: 3, kind: input, shape index: {}]   ;;  %s743_s4 = inlined_call_operand.vmem [shape: f32[1,128], index: 4, kind: input, shape index: {}]   ;;  %s744_s6 = inlined_call_operand.vmem [shape: f32[32,128], index: 6, kind: output, shape index: {}]  }
   0x1   :  { %417 = vmatprep.subr.bf16.mxu0 %v501_v0  ;;  %v31_v1 = vld [vmem:[%s738_s1] sm:$0xff]  ;;  %v32_v2 = vld [vmem:[%s738_s1 + $0x8] sm:$0xff]  ;;  %v33_v3 = vld [vmem:[%s738_s1 + $0x10] sm:$0xff]  ;;  %456 = vmatprep.subr.bf16.mxu1 %v501_v0  ;;  %vm185_vm2 = vcmask 1040384  }
   0x2   :  { %v418_v4 = vpack.c.bf16 %v32_v2, %v31_v1  ;;  %v34_v5 = vld [vmem:[%s738_s1 + $0x18] sm:$0xff]  ;;  %v35_v7 = vld [vmem:[%s738_s1 + $0x20] sm:$0xff]  ;;  %v36_v8 = vld [vmem:[%s738_s1 + $0x28] sm:$0xff]  ;;  %414 = vmatprep.mubr.msk.f32.mxu1 %vm503_vm1, %v502_v41 }
   0x3   :  { %v421_v6 = vpack.c.bf16 %v34_v5, %v33_v3  ;;  %v424_v9 = vpack.c.bf16 %v36_v8, %v35_v7  ;;  %v37_v10 = vld [vmem:[%s738_s1 + $0x30] sm:$0xff]  ;;  %v38_v11 = vld [vmem:[%s738_s1 + $0x38] sm:$0xff]  ;;  %v24_v12 = vld [vmem:[%s739_s0 + $0x8] sm:$0xff] }
   0x4   :  { %419 = vmatpush1.bf16.msra.mxu0 %v418_v4  ;;  %355 = vmatprep.mubr.msk.f32.mxu0 %vm65_vm0, %v24_v12  ;;  %v427_v13 = vpack.c.bf16 %v38_v11, %v37_v10  ;;  %v39_v14 = vld [vmem:[%s738_s1 + $0x40] sm:$0xff]  ;;  %v40_v15 = vld [vmem:[%s738_s1 + $0x48] sm:$0xff]  ;;  %v41_v17 = vld [vmem:[%s738_s1 + $0x50] sm:$0xff] }
   0x5   :  { %420 = vmatprep.subr.bf16.mxu0 %v501_v0  ;;  %v430_v16 = vpack.c.bf16 %v40_v15, %v39_v14  ;;  %v42_v18 = vld [vmem:[%s738_s1 + $0x58] sm:$0xff]  ;;  %v43_v20 = vld [vmem:[%s738_s1 + $0x60] sm:$0xff]  ;;  %v44_v21 = vld [vmem:[%s738_s1 + $0x68] sm:$0xff] }
   0x6   :  { %v433_v19 = vpack.c.bf16 %v42_v18, %v41_v17  ;;  %v436_v22 = vpack.c.bf16 %v44_v21, %v43_v20  ;;  %v45_v23 = vld [vmem:[%s738_s1 + $0x70] sm:$0xff]  ;;  %v46_v24 = vld [vmem:[%s738_s1 + $0x78] sm:$0xff]  ;;  %v47_v26 = vld [vmem:[%s738_s1 + $0x80] sm:$0xff] }
   0x7   :  { %v439_v25 = vpack.c.bf16 %v46_v24, %v45_v23  ;;  %v48_v27 = vld [vmem:[%s738_s1 + $0x88] sm:$0xff]  ;;  %v49_v29 = vld [vmem:[%s738_s1 + $0x90] sm:$0xff]  ;;  %v50_v30 = vld [vmem:[%s738_s1 + $0x98] sm:$0xff] }
   0x8   :  { %422 = vmatpush1.bf16.msra.mxu0 %v421_v6  ;;  %v442_v28 = vpack.c.bf16 %v48_v27, %v47_v26  ;;  %v445_v31 = vpack.c.bf16 %v50_v30, %v49_v29  ;;  %v51_v32 = vld [vmem:[%s738_s1 + $0xa0] sm:$0xff]  ;;  %v52_v33 = vld [vmem:[%s738_s1 + $0xa8] sm:$0xff]  ;;  %v53_v35 = vld [vmem:[%s738_s1 + $0xb0] sm:$0xff] }
   0x9   :  { %423 = vmatprep.subr.bf16.mxu0 %v501_v0  ;;  %v448_v34 = vpack.c.bf16 %v52_v33, %v51_v32  ;;  %v54_v36 = vld [vmem:[%s738_s1 + $0xb8] sm:$0xff]  ;;  %v55_v38 = vld [vmem:[%s738_s1 + $0xc0] sm:$0xff]  ;;  %v56_v39 = vld [vmem:[%s738_s1 + $0xc8] sm:$0xff] }
   0xa   :  { %v451_v37 = vpack.c.bf16 %v54_v36, %v53_v35  ;;  %v454_v40 = vpack.c.bf16 %v56_v39, %v55_v38  ;;  %v57_v42 = vld [vmem:[%s738_s1 + $0xd0] sm:$0xff]  ;;  %v23_v43 = vld [vmem:[%s739_s0] sm:$0xff]  ;;  %v26_v44 = vld [vmem:[%s739_s0 + $0x18] sm:$0xff] }
   0xb   :  { %v25_v45 = vld [vmem:[%s739_s0 + $0x10] sm:$0xff]  ;;  %v28_v46 = vld [vmem:[%s739_s0 + $0x28] sm:$0xff]  ;;  %v27_v47 = vld [vmem:[%s739_s0 + $0x20] sm:$0xff] }
   0xc   :  { %425 = vmatpush1.bf16.msra.mxu0 %v424_v9  ;;  %v30_v48 = vld [vmem:[%s739_s0 + $0x38] sm:$0xff]  ;;  %v29_v49 = vld [vmem:[%s739_s0 + $0x30] sm:$0xff]  ;;  %v187_v50 = vld [vmem:[%s740_s5] sm:$0xff] }
   0xd   :  { %426 = vmatprep.subr.bf16.mxu0 %v501_v0  ;;  %v188_v51 = vld [vmem:[%s740_s5 + $0x8] sm:$0xff]  ;;  %v189_v53 = vld [vmem:[%s740_s5 + $0x10] sm:$0xff]  ;;  %v190_v54 = vld [vmem:[%s740_s5 + $0x18] sm:$0xff] }
   0xe   :  { %v457_v52 = vpack.c.bf16 %v188_v51, %v187_v50  ;;  %v460_v55 = vpack.c.bf16 %v190_v54, %v189_v53  ;;  %v191_v56 = vld [vmem:[%s740_s5 + $0x20] sm:$0xff]  ;;  %v192_v57 = vld [vmem:[%s740_s5 + $0x28] sm:$0xff]  ;;  %v193_v59 = vld [vmem:[%s740_s5 + $0x30] sm:$0xff]  ;;  %v278_v50 = vlaneseq }
   0xf   :  { %v463_v58 = vpack.c.bf16 %v192_v57, %v191_v56  ;;  %v194_v60 = vld [vmem:[%s740_s5 + $0x38] sm:$0xff]  ;;  %v195_v62 = vld [vmem:[%s740_s5 + $0x40] sm:$0xff]  ;;  %v196_v63 = vld [vmem:[%s740_s5 + $0x48] sm:$0xff] }
  0x10   :  { %428 = vmatpush1.bf16.msra.mxu0 %v427_v13  ;;  %458 = vmatpush3.bf16.msra.mxu1 %v457_v52  ;;  %v466_v61 = vpack.c.bf16 %v194_v60, %v193_v59  ;;  %v469_v1 = vpack.c.bf16 %v196_v63, %v195_v62  ;;  %v197_v2 = vld [vmem:[%s740_s5 + $0x50] sm:$0xff]  ;;  %v198_v3 = vld [vmem:[%s740_s5 + $0x58] sm:$0xff]  ;;  %v199_v5 = vld [vmem:[%s740_s5 + $0x60] sm:$0xff]  ;;  %v279_v52 = vshrl.u32 %v278_v50, 7 }
  0x11   :  { %429 = vmatprep.subr.bf16.mxu0 %v501_v0  ;;  %459 = vmatprep.subr.bf16.mxu1 %v501_v0  ;;  %v472_v4 = vpack.c.bf16 %v198_v3, %v197_v2  ;;  %v200_v6 = vld [vmem:[%s740_s5 + $0x68] sm:$0xff]  ;;  %v201_v8 = vld [vmem:[%s740_s5 + $0x70] sm:$0xff]  ;;  %v202_v9 = vld [vmem:[%s740_s5 + $0x78] sm:$0xff] }
  0x12   :  { %v475_v7 = vpack.c.bf16 %v200_v6, %v199_v5  ;;  %v478_v10 = vpack.c.bf16 %v202_v9, %v201_v8  ;;  %v354_v13 = vld [vmem:[%s741_s2] ss:$0 sm:$0xff]  ;;  %v280_v54 = vsub.s32 0, %v279_v52  ;;  %v290_v56 = vsub.s32 1, %v279_v52 }
  0x13   :  { %v359_v63 = vld [vmem:[%s742_s3] ss:$0 sm:$0xff] }
  0x14   :  { %431 = vmatpush1.bf16.msra.mxu0 %v430_v16  ;;  %461 = vmatpush3.bf16.msra.mxu1 %v460_v55  ;;  %v360_v5 = vld [vmem:[%s743_s4] ss:$0 sm:$0xff] }
  0x15   :  { %432 = vmatprep.subr.bf16.mxu0 %v501_v0  ;;  %462 = vmatprep.subr.bf16.mxu1 %v501_v0 }
  0x18   :  { %434 = vmatpush1.bf16.msra.mxu0 %v433_v19  ;;  %464 = vmatpush3.bf16.msra.mxu1 %v463_v58 }
  0x19   :  { %435 = vmatprep.subr.bf16.mxu0 %v501_v0  ;;  %465 = vmatprep.subr.bf16.mxu1 %v501_v0 }
  0x1c   :  { %437 = vmatpush1.bf16.msra.mxu0 %v436_v22  ;;  %467 = vmatpush3.bf16.msra.mxu1 %v466_v61 }
  0x1d   :  { %438 = vmatprep.subr.bf16.mxu0 %v501_v0  ;;  %468 = vmatprep.subr.bf16.mxu1 %v501_v0 }
  0x20   :  { %440 = vmatpush1.bf16.msra.mxu0 %v439_v25  ;;  %470 = vmatpush3.bf16.msra.mxu1 %v469_v1 }
  0x21   :  { %441 = vmatprep.subr.bf16.mxu0 %v501_v0  ;;  %471 = vmatprep.subr.bf16.mxu1 %v501_v0 }
  0x24   :  { %443 = vmatpush1.bf16.msra.mxu0 %v442_v28  ;;  %473 = vmatpush3.bf16.msra.mxu1 %v472_v4 }
  0x25   :  { %444 = vmatprep.subr.bf16.mxu0 %v501_v0  ;;  %474 = vmatprep.subr.bf16.mxu1 %v501_v0 }
  0x28   :  { %446 = vmatpush1.bf16.msra.mxu0 %v445_v31  ;;  %476 = vmatpush3.bf16.msra.mxu1 %v475_v7 }
  0x29   :  { %447 = vmatprep.subr.bf16.mxu0 %v501_v0  ;;  %477 = vmatprep.subr.bf16.mxu1 %v501_v0 }
  0x2c   :  { %449 = vmatpush1.bf16.msra.mxu0 %v448_v34  ;;  %479 = vmatpush3.bf16.msra.mxu1 %v478_v10 }
  0x2d   :  { %450 = vmatprep.subr.bf16.mxu0 %v501_v0 }
  0x30   :  { %452 = vmatpush1.bf16.msra.mxu0 %v451_v37 }
  0x31   :  { %453 = vmatprep.subr.bf16.mxu0 %v501_v0 }
  0x34   :  { %455 = vmatpush1.bf16.msra.mxu0 %v454_v40 }
  0x35   :  { %130 = vmatprep.subr.mxu0 %v502_v41 }
  0x38   :  { %131 = vmatpush1.msra.mxu0 %v57_v42 }
  0x39   :  { %143 = vmatmul.mubr.f32.vlgmr.msra.gmra.mrb[0].mxu0 %v23_v43 }
  0x3a   :  { %356 = vmatprep.mubr.msk.f32.mxu0 %vm65_vm0, %v26_v44 }
  0x3d   :  { %148 = vmatmul.mubr.f32.gmra.mrb[2].mxu0 %v25_v45 }
  0x3e   :  { %357 = vmatprep.mubr.msk.f32.mxu0 %vm65_vm0, %v28_v46 }
  0x41   :  { %153 = vmatmul.mubr.f32.gmra.mrb[4].mxu0 %v27_v47 }
  0x42   :  { %358 = vmatprep.mubr.msk.f32.mxu0 %vm65_vm0, %v30_v48 }
  0x45   :  { %158 = vmatmul.mubr.f32.gmra.mrb[6].mxu0 %v29_v49 }
 0x10c   :  { %v144_v11 = vpop.f32.mrb[0].mxu0 }
 0x10d   :  { %v146_v12 = vpop.f32.mrb[1].mxu0  ;;  %v145_v17 = vadd.f32 %v354_v13, %v144_v11 }
 0x10f   :  { %v172_v22 = vmul.f32 %v145_v17, %v145_v17 }
 0x110   :  { %v149_v14 = vpop.f32.mrb[2].mxu0 }
 0x111   :  { %v150_v15 = vadd.f32 %v354_v13, %v149_v14  ;;  %v151_v16 = vpop.f32.mrb[3].mxu0 }
 0x113   :  { %v173_v19 = vmul.f32 %v150_v15, %v150_v15  ;;  %v163_v23 = vadd.f32 %v150_v15, %v145_v17 }
 0x114   :  { %v154_v18 = vpop.f32.mrb[4].mxu0 }
 0x115   :  { %v155_v20 = vadd.f32 %v354_v13, %v154_v18  ;;  %v156_v21 = vpop.f32.mrb[5].mxu0  ;;  %v176_v0 = vadd.f32 %v173_v19, %v172_v22 }
 0x117   :  { %v174_v24 = vmul.f32 %v155_v20, %v155_v20  ;;  %v164_v26 = vadd.f32 %v163_v23, %v155_v20 }
 0x118   :  { %v159_v25 = vpop.f32.mrb[6].mxu0 }
 0x119   :  { %v160_v27 = vadd.f32 %v354_v13, %v159_v25  ;;  %v161_v28 = vpop.f32.mrb[7].mxu0  ;;  %v177_v29 = vadd.f32 %v176_v0, %v174_v24 }
 0x11b   :  { %v165_v30 = vadd.f32 %v164_v26, %v160_v27  ;;  %v175_v31 = vmul.f32 %v160_v27, %v160_v27 }
 0x11d   :  { %v166_v32 = vrot.slane %v165_v30, 4  ;;  %v178_v33 = vadd.f32 %v177_v29, %v175_v31 }
 0x11f   :  { %v167_v34 = vadd.f32 %v166_v32, %v165_v30  ;;  %v179_v35 = vrot.slane %v178_v33, 4 }
 0x121   :  { %v168_v36 = vrot.slane %v167_v34, 2  ;;  %v180_v37 = vadd.f32 %v179_v35, %v178_v33 }
 0x123   :  { %v169_v38 = vadd.f32 %v168_v36, %v167_v34  ;;  %v181_v39 = vrot.slane %v180_v37, 2 }
 0x125   :  { %v170_v40 = vrot.slane %v169_v38, 1  ;;  %v182_v41 = vadd.f32 %v181_v39, %v180_v37 }
 0x127   :  { %v183_v42 = vrot.slane %v182_v41, 1  ;;  %v171_v43 = vadd.f32 %v170_v40, %v169_v38 }
 0x129   :  { %v184_v44 = vadd.f32 %v183_v42, %v182_v41 }
 0x12b   :  { %v186_v45 = vsel %vm185_vm2, %v171_v43, %v184_v44 }
 0x12c   :  { %415 = vmatmul.mubr.f32.vlgmr.msra.gmra.mrb[0].mxu1 %v186_v45 }
 0x1ff   :  { %v269_v46 = vpop.f32.mrb[0].mxu1 }
 0x200   :  { %v273_v47 = vmul.f32 %v269_v46, %v269_v46  ;;  %v416_v48 = vpop.f32.mrb[1].mxu1  ;;  %v281_v55 = vrot.slane %v269_v46, %v280_v54 }
 0x202   :  { %v275_v49 = vrot.slane %v273_v47, 7  ;;  %v282_v58 = vsub.f32 %v145_v17, %v281_v55  ;;  %v283_v59 = vsub.f32 %v150_v15, %v281_v55  ;;  %v284_v60 = vsub.f32 %v155_v20, %v281_v55 }
 0x203   :  { %v285_v61 = vsub.f32 %v160_v27, %v281_v55 }
 0x204   :  { %v277_v51 = vsub.f32 %v269_v46, %v275_v49 }
 0x206   :  { %v286_v53 = vadd.f32 1e-05, %v277_v51 }
 0x208   :  { %483 = vrsqrt.f32 %v286_v53 }
 0x212   :  { %v484_v57 = vpop.eup %483 }
 0x213   :  { %v291_v62 = vrot.slane %v484_v57, %v290_v56 }
 0x215   :  { %v292_v1 = vmul.f32 %v291_v62, %v282_v58  ;;  %v293_v2 = vmul.f32 %v291_v62, %v283_v59  ;;  %v294_v3 = vmul.f32 %v291_v62, %v284_v60  ;;  %v295_v4 = vmul.f32 %v291_v62, %v285_v61 }
 0x217   :  { %v303_v6 = vmul.f32 %v359_v63, %v292_v1  ;;  %v304_v7 = vmul.f32 %v359_v63, %v293_v2  ;;  %v305_v8 = vmul.f32 %v359_v63, %v294_v3  ;;  %v306_v9 = vmul.f32 %v359_v63, %v295_v4 }
 0x219   :  { %v314_v10 = vadd.f32 %v360_v5, %v303_v6  ;;  %v315_v11 = vadd.f32 %v360_v5, %v304_v7  ;;  %v316_v12 = vadd.f32 %v360_v5, %v305_v8  ;;  %v317_v13 = vadd.f32 %v360_v5, %v306_v9 }
 0x21b   :  { %v361_v14 = vmul.f32 -1.442695, %v314_v10  ;;  %v362_v15 = vmul.f32 -1.442695, %v315_v11  ;;  %v363_v16 = vmul.f32 -1.442695, %v316_v12 }
 0x21c   :  { %v364_v17 = vmul.f32 -1.442695, %v317_v13 }
 0x21d   :  { %485 = vpow2.f32 %v361_v14 }
 0x21e   :  { %487 = vpow2.f32 %v362_v15 }
 0x21f   :  { %489 = vpow2.f32 %v363_v16 }
 0x220   :  { %491 = vpow2.f32 %v364_v17 }
 0x227   :  { %v486_v18 = vpop.eup %485 }
 0x228   :  { %v488_v19 = vpop.eup %487  ;;  %v330_v20 = vadd.f32 1.0, %v486_v18 }
 0x229   :  { %v490_v21 = vpop.eup %489  ;;  %v331_v22 = vadd.f32 1.0, %v488_v19 }
 0x22a   :  { %v492_v23 = vpop.eup %491  ;;  %v332_v24 = vadd.f32 1.0, %v490_v21  ;;  %493 = vrcp.f32 %v330_v20 }
 0x22b   :  { %v333_v25 = vadd.f32 1.0, %v492_v23  ;;  %495 = vrcp.f32 %v331_v22 }
 0x22c   :  { %497 = vrcp.f32 %v332_v24 }
 0x22d   :  { %499 = vrcp.f32 %v333_v25 }
 0x234   :  { %v494_v0 = vpop.eup %493 }
 0x235   :  { %v496_v26 = vpop.eup %495  ;;  %v342_v27 = vmul.f32 %v494_v0, %v314_v10 }
 0x236   :  { %v498_v28 = vpop.eup %497  ;;  %v343_v29 = vmul.f32 %v496_v26, %v315_v11 }
 0x237   :  { %v500_v30 = vpop.eup %499  ;;  %v344_v31 = vmul.f32 %v498_v28, %v316_v12  ;;  %346 = vst [vmem:[%s744_s6] sm:$0xff] %v342_v27 }
 0x238   :  { %v345_v32 = vmul.f32 %v500_v30, %v317_v13  ;;  %347 = vst [vmem:[%s744_s6 + $0x8] sm:$0xff] %v343_v29 }
 0x239   :  { %348 = vst [vmem:[%s744_s6 + $0x10] sm:$0xff] %v344_v31 }
 0x23a   :  { %349 = vst [vmem:[%s744_s6 + $0x18] sm:$0xff] %v345_v32 }

</bundles_post_ra>
